<compile_context>
chip_gen: v6e
topology: v6e:2x2x1
jax: 0.10.0
libtpu: 0.0.40
codegen_flags: <defaults>
</compile_context>

<pallas_src>
import jax
import jax.numpy as jnp
from jax.experimental import pallas as pl
from jax.experimental.pallas import tpu as pltpu


# ----------------------------------------------------------------------------
# Tile-size helper: largest 8-aligned tile <= cap that splits M into >= 2
# blocks (so both v7x TensorCores get work); falls back to the full extent.
# ----------------------------------------------------------------------------
def _choose_tm(M, cap=2048):
    limit = min(cap, M)
    for t in range(limit, 7, -1):
        if t % 8 == 0 and M % t == 0 and M // t >= 2:
            return t
    return M if M <= cap else (cap // 8) * 8


# ----------------------------------------------------------------------------
# Kernel 1: fused backbone stub + global 1x1 classifier (test rows only).
#   While the (tm, nFeat) activation tile is still in VMEM, immediately apply
#   the (padded, lane-dense) classifier weights.  f is stored as bf16.
# ----------------------------------------------------------------------------
def _backbone_cls_kernel(x_ref, wb_ref, bb_ref, wg_ref, bg_ref, f_ref, g_ref):
    f = jnp.maximum(
        jnp.dot(x_ref[...], wb_ref[...], preferred_element_type=jnp.float32)
        + bb_ref[...], 0.0)
    fb = f.astype(jnp.bfloat16)
    f_ref[...] = fb
    g_ref[...] = (jnp.dot(fb, wg_ref[...], preferred_element_type=jnp.float32)
                  + bg_ref[...]).astype(g_ref.dtype)


def backbone_with_classifier(x, wb, bb, wg, bg):
    M, Cin = x.shape
    nfeat = wb.shape[1]
    ncls = wg.shape[1]
    tm = _choose_tm(M)
    cost = pl.CostEstimate(
        flops=2 * M * Cin * nfeat + 2 * M * nfeat * ncls,
        transcendentals=0,
        bytes_accessed=(M * Cin * 2 + Cin * nfeat * 2 + nfeat * 4
                        + nfeat * ncls * 2 + ncls * 4
                        + M * nfeat * 2 + M * ncls * 4))
    return pl.pallas_call(
        _backbone_cls_kernel,
        out_shape=(jax.ShapeDtypeStruct((M, nfeat), jnp.bfloat16),
                   jax.ShapeDtypeStruct((M, ncls), jnp.float32)),
        grid=(pl.cdiv(M, tm),),
        in_specs=[
            pl.BlockSpec((tm, Cin), lambda i: (i, 0)),
            pl.BlockSpec((Cin, nfeat), lambda i: (0, 0)),   # resident
            pl.BlockSpec((1, nfeat), lambda i: (0, 0)),     # resident
            pl.BlockSpec((nfeat, ncls), lambda i: (0, 0)),  # resident
            pl.BlockSpec((1, ncls), lambda i: (0, 0)),      # resident
        ],
        out_specs=(pl.BlockSpec((tm, nfeat), lambda i: (i, 0)),
                   pl.BlockSpec((tm, ncls), lambda i: (i, 0))),
        compiler_params=pltpu.CompilerParams(dimension_semantics=("parallel",)),
        cost_estimate=cost,
    )(x, wb, bb, wg, bg)


# ----------------------------------------------------------------------------
# Kernel 2: per-episode prototype "conv weights", fully fused:
#   backbone stub on the episode's train rows -> HW-mean pool per sample ->
#   class-mean via ytrain^T -> L2-normalize over channels.
#   (The HW-mean commutes with the class bmm; the per-class count division
#    cancels under the L2 normalization, so it is dropped — this also removes
#    the inf/NaN hazard for classes with zero support samples.)
# ----------------------------------------------------------------------------
def _proto_kernel(y_ref, x_ref, wb_ref, bb_ref, w_ref):
    f = jnp.maximum(
        jnp.dot(x_ref[...], wb_ref[...], preferred_element_type=jnp.float32)
        + bb_ref[...], 0.0)                                    # (nt*HW, nFeat)
    nt = y_ref.shape[1]
    fmean = jnp.mean(f.reshape(nt, -1, f.shape[-1]), axis=1)   # (nt, nFeat)
    proto = jnp.dot(y_ref[...].astype(jnp.bfloat16),
                    fmean.astype(jnp.bfloat16),
                    preferred_element_type=jnp.float32)        # (K, nFeat)
    sumsq = jnp.sum(proto * proto, axis=1, keepdims=True)      # (K, 1)
    w_ref[...] = (proto * jax.lax.rsqrt(jnp.maximum(sumsq, 1e-24))).astype(
        w_ref.dtype)


def proto_conv_weight(ytrain_T, xtrain_rows, wb, bb):
    b, K, nt = ytrain_T.shape
    _, R, Cin = xtrain_rows.shape            # R = nt * HW
    nfeat = wb.shape[1]
    cost = pl.CostEstimate(
        flops=b * (2 * R * Cin * nfeat + 2 * K * nt * nfeat),
        transcendentals=b * K,
        bytes_accessed=(b * (K * nt * 4 + R * Cin * 2 + K * nfeat * 4)
                        + Cin * nfeat * 2 + nfeat * 4))
    return pl.pallas_call(
        _proto_kernel,
        out_shape=jax.ShapeDtypeStruct((b, K, nfeat), jnp.float32),
        grid=(b,),
        in_specs=[
            pl.BlockSpec((None, K, nt), lambda i: (i, 0, 0)),
            pl.BlockSpec((None, R, Cin), lambda i: (i, 0, 0)),
            pl.BlockSpec((Cin, nfeat), lambda i: (0, 0)),      # resident
            pl.BlockSpec((1, nfeat), lambda i: (0, 0)),        # resident
        ],
        out_specs=pl.BlockSpec((None, K, nfeat), lambda i: (i, 0, 0)),
        compiler_params=pltpu.CompilerParams(dimension_semantics=("parallel",)),
        cost_estimate=cost,
    )(ytrain_T, xtrain_rows, wb, bb)


# ----------------------------------------------------------------------------
# Kernel 3: class scores — ONE lane-dense matmul per episode.
#   score[b, k, t*HW + hw] = <ftest[b, t, hw, :], conv_weight[b, k, :]>
#   (the PyTorch normalize-then-rescale of ftest cancels algebraically).
# ----------------------------------------------------------------------------
def _score_kernel(w_ref, fte_ref, o_ref):
    s = jax.lax.dot_general(
        w_ref[...].astype(jnp.bfloat16), fte_ref[...],         # (K,C) x (R,C)
        (((1,), (1,)), ((), ())),
        preferred_element_type=jnp.float32)                    # (K, R)
    o_ref[...] = s.astype(o_ref.dtype)


def cls_score(proto_w, ftest_rows):
    b, K, C = proto_w.shape
    _, R, _ = ftest_rows.shape               # R = n2 * HW
    cost = pl.CostEstimate(
        flops=b * 2 * K * C * R,
        transcendentals=0,
        bytes_accessed=b * (K * C * 4 + R * C * 2 + K * R * 4))
    return pl.pallas_call(
        _score_kernel,
        out_shape=jax.ShapeDtypeStruct((b, K, R), jnp.float32),
        grid=(b,),
        in_specs=[
            pl.BlockSpec((None, K, C), lambda i: (i, 0, 0)),
            pl.BlockSpec((None, R, C), lambda i: (i, 0, 0)),
        ],
        out_specs=pl.BlockSpec((None, K, R), lambda i: (i, 0, 0)),
        compiler_params=pltpu.CompilerParams(dimension_semantics=("parallel",)),
        cost_estimate=cost,
    )(proto_w, ftest_rows)


# ----------------------------------------------------------------------------
# Model wrapper (glue + kernels)
# ----------------------------------------------------------------------------
def init_params(key, in_channels, nFeat, num_classes):
    k1, k2, k3, k4 = jax.random.split(key, 4)
    return {
        # backbone stub: 1x1 conv projection in_channels -> nFeat
        "Wb": 0.1 * jax.random.normal(k1, (in_channels, nFeat), jnp.float32),
        "bb": 0.01 * jax.random.normal(k2, (nFeat,), jnp.float32),
        # global_clasifier: nn.Conv2d(nFeat, num_classes, kernel_size=1)
        "Wg": 0.1 * jax.random.normal(k3, (nFeat, num_classes), jnp.float32),
        "bg": 0.01 * jax.random.normal(k4, (num_classes,), jnp.float32),
    }


@jax.jit
def model_forward(params, xtrain, xtest, ytrain, ytest):
    # scale_cls and ytest are unused in the PyTorch forward (non-return_test path)
    del ytest
    b, nt, C, H, W = xtrain.shape
    ns = xtest.shape[1]
    K = ytrain.shape[2]
    nFeat = params["Wb"].shape[1]
    num_classes = params["Wg"].shape[1]
    HW = H * W

    ytrain_T = jnp.transpose(ytrain, (0, 2, 1)).astype(jnp.float32)   # (b, K, nt)

    # NCHW -> channels-last rows, cast to bf16 (fused with the transpose)
    xtr = jnp.transpose(xtrain.reshape(b * nt, C, H, W), (0, 2, 3, 1)) \
             .reshape(b, nt * HW, C).astype(jnp.bfloat16)
    xte = jnp.transpose(xtest.reshape(b * ns, C, H, W), (0, 2, 3, 1)) \
             .reshape(b * ns * HW, C).astype(jnp.bfloat16)

    Wb = params["Wb"].astype(jnp.bfloat16)
    bb = params["bb"].reshape(1, -1).astype(jnp.float32)

    # pad classifier to a 128-lane multiple for unmasked stores
    ncls_pad = max(128, ((num_classes + 127) // 128) * 128)
    Wg = jnp.zeros((nFeat, ncls_pad), jnp.bfloat16).at[:, :num_classes].set(
        params["Wg"].astype(jnp.bfloat16))
    bg = jnp.zeros((1, ncls_pad), jnp.float32).at[:, :num_classes].set(
        params["bg"].astype(jnp.float32))

    # test rows: f = self.base(x) fused with self.global_clasifier
    f_test, gp = backbone_with_classifier(xte, Wb, bb, Wg, bg)
    global_pred = jnp.transpose(
        gp[:, :num_classes].reshape(b * ns, H, W, num_classes), (0, 3, 1, 2))

    # train rows: backbone + process_feature + prototype normalization, fused
    proto_w = proto_conv_weight(ytrain_T, xtr, Wb, bb)                # (b, K, nFeat)

    # get_score (patch=True): one lane-dense matmul per episode
    ftest_rows = f_test.reshape(b, ns * HW, nFeat)
    scores = cls_score(proto_w, ftest_rows)                           # (b, K, ns*HW)
    scores = jnp.transpose(scores.reshape(b, K, ns, HW), (0, 2, 1, 3)) \
                .reshape(b * ns, K, H, W)

    return global_pred, [scores]


if __name__ == "__main__":
    # Small deterministic example shapes
    b, nt, ns, K = 2, 4, 3, 2          # batch, num_train, num_test, n_way
    C, H, W = 4, 8, 8                  # input images (NCHW)
    nFeat, num_classes = 128, 8        # nFeat lane-dense (real backbones: 512/640)
    scale_cls = 7.0                    # stored but unused in the forward pass

    key = jax.random.PRNGKey(0)
    kp, kx1, kx2 = jax.random.split(key, 3)

    params = init_params(kp, C, nFeat, num_classes)

    xtrain = jax.random.normal(kx1, (b, nt, C, H, W), jnp.float32)
    xtest = jax.random.normal(kx2, (b, ns, C, H, W), jnp.float32)
    # one-hot training labels: classes [0, 0, 1, 1] in each episode
    train_labels = jnp.tile(jnp.array([0, 0, 1, 1], jnp.int32), (b, 1))
    ytrain = jax.nn.one_hot(train_labels, K, dtype=jnp.float32)       # (b, nt, K)
    test_labels = jnp.tile(jnp.array([0, 1, 0], jnp.int32), (b, 1))
    ytest = jax.nn.one_hot(test_labels, K, dtype=jnp.float32)         # (b, ns, K)

    global_pred, cls_scores = model_forward(params, xtrain, xtest, ytrain, ytest)
    jax.block_until_ready(global_pred)
    jax.block_until_ready(cls_scores[0])

    assert global_pred.shape == (b * ns, num_classes, H, W)
    assert cls_scores[0].shape == (b * ns, K, H, W)
    assert bool(jnp.all(jnp.isfinite(global_pred)))
    assert bool(jnp.all(jnp.isfinite(cls_scores[0])))
    print("KERNEL_OK")
</pallas_src>

<mosaic_0001>
module attributes {stable_mosaic.version = 11 : i64} {
  func.func @_backbone_cls_kernel(%arg0: i32, %arg1: memref<192x4xbf16, #tpu.memory_space<vmem>>, %arg2: memref<4x128xbf16, #tpu.memory_space<vmem>>, %arg3: memref<1x128xf32, #tpu.memory_space<vmem>>, %arg4: memref<128x128xbf16, #tpu.memory_space<vmem>>, %arg5: memref<1x128xf32, #tpu.memory_space<vmem>>, %arg6: memref<192x128xbf16, #tpu.memory_space<vmem>>, %arg7: memref<192x128xf32, #tpu.memory_space<vmem>>) attributes {dimension_semantics = [#tpu.dimension_semantics<parallel>], iteration_bounds = array<i64: 2>, scalar_prefetch = 0 : i64, scratch_operands = 0 : i64, tpu.core_type = #tpu.core_type<tc>, window_params = [{transform_indices = @transform_0, window_bounds = array<i64: 192, 4>}, {pipeline_mode = #tpu.pipeline_mode<synchronous>, transform_indices = @transform_1, window_bounds = array<i64: 4, 128>}, {pipeline_mode = #tpu.pipeline_mode<synchronous>, transform_indices = @transform_2, window_bounds = array<i64: 1, 128>}, {pipeline_mode = #tpu.pipeline_mode<synchronous>, transform_indices = @transform_3, window_bounds = array<i64: 128, 128>}, {pipeline_mode = #tpu.pipeline_mode<synchronous>, transform_indices = @transform_4, window_bounds = array<i64: 1, 128>}, {transform_indices = @transform_5, window_bounds = array<i64: 192, 128>}, {transform_indices = @transform_6, window_bounds = array<i64: 192, 128>}]} {
    %c0 = arith.constant 0 : index
    %c0_0 = arith.constant 0 : index
    %0 = vector.load %arg1[%c0, %c0_0] : memref<192x4xbf16, #tpu.memory_space<vmem>>, vector<192x4xbf16>
    %c0_1 = arith.constant 0 : index
    %c0_2 = arith.constant 0 : index
    %1 = vector.load %arg2[%c0_1, %c0_2] : memref<4x128xbf16, #tpu.memory_space<vmem>>, vector<4x128xbf16>
    %cst = arith.constant dense<0.000000e+00> : vector<192x128xf32>
    %2 = tpu.matmul %0, %1, %cst {dimension_numbers = #tpu.dot_dimension_numbers<[1], [0], [0], [1], [0, 0, 1, 1], [], []>} : vector<192x4xbf16>, vector<4x128xbf16>, vector<192x128xf32> -> vector<192x128xf32>
    %c0_3 = arith.constant 0 : index
    %c0_4 = arith.constant 0 : index
    %3 = vector.load %arg3[%c0_3, %c0_4] : memref<1x128xf32, #tpu.memory_space<vmem>>, vector<1x128xf32>
    %4 = vector.broadcast %3 : vector<1x128xf32> to vector<192x128xf32>
    %5 = arith.addf %2, %4 : vector<192x128xf32>
    %cst_5 = arith.constant 0.000000e+00 : f32
    %6 = vector.broadcast %cst_5 : f32 to vector<192x128xf32>
    %7 = arith.maximumf %5, %6 : vector<192x128xf32>
    %8 = arith.truncf %7 : vector<192x128xf32> to vector<192x128xbf16>
    %c0_6 = arith.constant 0 : index
    %c0_7 = arith.constant 0 : index
    %9 = vector.load %arg6[%c0_6, %c0_7] : memref<192x128xbf16, #tpu.memory_space<vmem>>, vector<192x128xbf16>
    tpu.vector_store %arg6[%c0_6, %c0_7], %8 {strides = array<i32>} : memref<192x128xbf16, #tpu.memory_space<vmem>>, vector<192x128xbf16>,
    %c0_8 = arith.constant 0 : index
    %c0_9 = arith.constant 0 : index
    %10 = vector.load %arg4[%c0_8, %c0_9] : memref<128x128xbf16, #tpu.memory_space<vmem>>, vector<128x128xbf16>
    %cst_10 = arith.constant dense<0.000000e+00> : vector<192x128xf32>
    %11 = tpu.matmul %8, %10, %cst_10 {dimension_numbers = #tpu.dot_dimension_numbers<[1], [0], [0], [1], [0, 0, 1, 1], [], []>} : vector<192x128xbf16>, vector<128x128xbf16>, vector<192x128xf32> -> vector<192x128xf32>
    %c0_11 = arith.constant 0 : index
    %c0_12 = arith.constant 0 : index
    %12 = vector.load %arg5[%c0_11, %c0_12] : memref<1x128xf32, #tpu.memory_space<vmem>>, vector<1x128xf32>
    %13 = vector.broadcast %12 : vector<1x128xf32> to vector<192x128xf32>
    %14 = arith.addf %11, %13 : vector<192x128xf32>
    %c0_13 = arith.constant 0 : index
    %c0_14 = arith.constant 0 : index
    %15 = vector.load %arg7[%c0_13, %c0_14] : memref<192x128xf32, #tpu.memory_space<vmem>>, vector<192x128xf32>
    tpu.vector_store %arg7[%c0_13, %c0_14], %14 {strides = array<i32>} : memref<192x128xf32, #tpu.memory_space<vmem>>, vector<192x128xf32>,
    return
  }
  func.func @transform_0(%arg0: i32) -> (i32, i32) {
    %c0_i32 = arith.constant 0 : i32
    %c0_i32_0 = arith.constant 0 : i32
    return %arg0, %c0_i32 : i32, i32
  }
  func.func @transform_1(%arg0: i32) -> (i32, i32) {
    %c0_i32 = arith.constant 0 : i32
    %c0_i32_0 = arith.constant 0 : i32
    %c0_i32_1 = arith.constant 0 : i32
    return %c0_i32, %c0_i32_0 : i32, i32
  }
  func.func @transform_2(%arg0: i32) -> (i32, i32) {
    %c0_i32 = arith.constant 0 : i32
    %c0_i32_0 = arith.constant 0 : i32
    %c0_i32_1 = arith.constant 0 : i32
    return %c0_i32, %c0_i32_0 : i32, i32
  }
  func.func @transform_3(%arg0: i32) -> (i32, i32) {
    %c0_i32 = arith.constant 0 : i32
    %c0_i32_0 = arith.constant 0 : i32
    %c0_i32_1 = arith.constant 0 : i32
    return %c0_i32, %c0_i32_0 : i32, i32
  }
  func.func @transform_4(%arg0: i32) -> (i32, i32) {
    %c0_i32 = arith.constant 0 : i32
    %c0_i32_0 = arith.constant 0 : i32
    %c0_i32_1 = arith.constant 0 : i32
    return %c0_i32, %c0_i32_0 : i32, i32
  }
  func.func @transform_5(%arg0: i32) -> (i32, i32) {
    %c0_i32 = arith.constant 0 : i32
    %c0_i32_0 = arith.constant 0 : i32
    return %arg0, %c0_i32 : i32, i32
  }
  func.func @transform_6(%arg0: i32) -> (i32, i32) {
    %c0_i32 = arith.constant 0 : i32
    %c0_i32_0 = arith.constant 0 : i32
    return %arg0, %c0_i32 : i32, i32
  }
}

module attributes {stable_mosaic.version = 11 : i64} {
  func.func @_proto_kernel(%arg0: i32, %arg1: memref<1x2x4xf32, #tpu.memory_space<vmem>>, %arg2: memref<1x256x4xbf16, #tpu.memory_space<vmem>>, %arg3: memref<4x128xbf16, #tpu.memory_space<vmem>>, %arg4: memref<1x128xf32, #tpu.memory_space<vmem>>, %arg5: memref<1x2x128xf32, #tpu.memory_space<vmem>>) attributes {dimension_semantics = [#tpu.dimension_semantics<parallel>], iteration_bounds = array<i64: 2>, scalar_prefetch = 0 : i64, scratch_operands = 0 : i64, tpu.core_type = #tpu.core_type<tc>, window_params = [{transform_indices = @transform_0, window_bounds = array<i64: 1, 2, 4>}, {transform_indices = @transform_1, window_bounds = array<i64: 1, 256, 4>}, {pipeline_mode = #tpu.pipeline_mode<synchronous>, transform_indices = @transform_2, window_bounds = array<i64: 4, 128>}, {pipeline_mode = #tpu.pipeline_mode<synchronous>, transform_indices = @transform_3, window_bounds = array<i64: 1, 128>}, {transform_indices = @transform_4, window_bounds = array<i64: 1, 2, 128>}]} {
    %c0 = arith.constant 0 : index
    %c0_0 = arith.constant 0 : index
    %c0_1 = arith.constant 0 : index
    %0 = vector.load %arg2[%c0, %c0_0, %c0_1] : memref<1x256x4xbf16, #tpu.memory_space<vmem>>, vector<1x256x4xbf16>
    %1 = vector.shape_cast %0 : vector<1x256x4xbf16> to vector<256x4xbf16>
    %c0_2 = arith.constant 0 : index
    %c0_3 = arith.constant 0 : index
    %2 = vector.load %arg3[%c0_2, %c0_3] : memref<4x128xbf16, #tpu.memory_space<vmem>>, vector<4x128xbf16>
    %cst = arith.constant dense<0.000000e+00> : vector<256x128xf32>
    %3 = tpu.matmul %1, %2, %cst {dimension_numbers = #tpu.dot_dimension_numbers<[1], [0], [0], [1], [0, 0, 1, 1], [], []>} : vector<256x4xbf16>, vector<4x128xbf16>, vector<256x128xf32> -> vector<256x128xf32>
    %c0_4 = arith.constant 0 : index
    %c0_5 = arith.constant 0 : index
    %4 = vector.load %arg4[%c0_4, %c0_5] : memref<1x128xf32, #tpu.memory_space<vmem>>, vector<1x128xf32>
    %5 = vector.broadcast %4 : vector<1x128xf32> to vector<256x128xf32>
    %6 = arith.addf %3, %5 : vector<256x128xf32>
    %cst_6 = arith.constant 0.000000e+00 : f32
    %7 = vector.broadcast %cst_6 : f32 to vector<256x128xf32>
    %8 = arith.maximumf %6, %7 : vector<256x128xf32>
    %9 = vector.shape_cast %8 : vector<256x128xf32> to vector<4x64x128xf32>
    %cst_7 = arith.constant dense<0.000000e+00> : vector<4x128xf32>
    %10 = vector.multi_reduction <add>, %9, %cst_7 [1] : vector<4x64x128xf32> to vector<4x128xf32>
    %cst_8 = arith.constant 6.400000e+01 : f32
    %11 = vector.broadcast %cst_8 : f32 to vector<4x128xf32>
    %12 = arith.divf %10, %11 : vector<4x128xf32>
    %c0_9 = arith.constant 0 : index
    %c0_10 = arith.constant 0 : index
    %c0_11 = arith.constant 0 : index
    %13 = vector.load %arg1[%c0_9, %c0_10, %c0_11] : memref<1x2x4xf32, #tpu.memory_space<vmem>>, vector<1x2x4xf32>
    %14 = vector.shape_cast %13 : vector<1x2x4xf32> to vector<2x4xf32>
    %15 = arith.truncf %14 : vector<2x4xf32> to vector<2x4xbf16>
    %16 = arith.truncf %12 : vector<4x128xf32> to vector<4x128xbf16>
    %cst_12 = arith.constant dense<0.000000e+00> : vector<2x128xf32>
    %17 = tpu.matmul %15, %16, %cst_12 {dimension_numbers = #tpu.dot_dimension_numbers<[1], [0], [0], [1], [0, 0, 1, 1], [], []>} : vector<2x4xbf16>, vector<4x128xbf16>, vector<2x128xf32> -> vector<2x128xf32>
    %18 = arith.mulf %17, %17 : vector<2x128xf32>
    %cst_13 = arith.constant dense<0.000000e+00> : vector<2xf32>
    %19 = vector.multi_reduction <add>, %18, %cst_13 [1] : vector<2x128xf32> to vector<2xf32>
    %20 = vector.shape_cast %19 : vector<2xf32> to vector<2x1xf32>
    %cst_14 = arith.constant 1.000000e-24 : f32
    %21 = vector.broadcast %cst_14 : f32 to vector<2x1xf32>
    %22 = arith.maximumf %20, %21 : vector<2x1xf32>
    %23 = math.rsqrt %22 : vector<2x1xf32>
    %24 = vector.broadcast %23 : vector<2x1xf32> to vector<2x128xf32>
    %25 = arith.mulf %17, %24 : vector<2x128xf32>
    %c0_15 = arith.constant 0 : index
    %c0_16 = arith.constant 0 : index
    %c0_17 = arith.constant 0 : index
    %26 = vector.load %arg5[%c0_15, %c0_16, %c0_17] : memref<1x2x128xf32, #tpu.memory_space<vmem>>, vector<1x2x128xf32>
    %27 = vector.shape_cast %26 : vector<1x2x128xf32> to vector<2x128xf32>
    %28 = vector.shape_cast %25 : vector<2x128xf32> to vector<1x2x128xf32>
    tpu.vector_store %arg5[%c0_15, %c0_16, %c0_17], %28 {strides = array<i32>} : memref<1x2x128xf32, #tpu.memory_space<vmem>>, vector<1x2x128xf32>,
    return
  }
  func.func @transform_0(%arg0: i32) -> (i32, i32, i32) {
    %c0_i32 = arith.constant 0 : i32
    %c0_i32_0 = arith.constant 0 : i32
    %c0_i32_1 = arith.constant 0 : i32
    return %arg0, %c0_i32, %c0_i32_0 : i32, i32, i32
  }
  func.func @transform_1(%arg0: i32) -> (i32, i32, i32) {
    %c0_i32 = arith.constant 0 : i32
    %c0_i32_0 = arith.constant 0 : i32
    %c0_i32_1 = arith.constant 0 : i32
    return %arg0, %c0_i32, %c0_i32_0 : i32, i32, i32
  }
  func.func @transform_2(%arg0: i32) -> (i32, i32) {
    %c0_i32 = arith.constant 0 : i32
    %c0_i32_0 = arith.constant 0 : i32
    %c0_i32_1 = arith.constant 0 : i32
    return %c0_i32, %c0_i32_0 : i32, i32
  }
  func.func @transform_3(%arg0: i32) -> (i32, i32) {
    %c0_i32 = arith.constant 0 : i32
    %c0_i32_0 = arith.constant 0 : i32
    %c0_i32_1 = arith.constant 0 : i32
    return %c0_i32, %c0_i32_0 : i32, i32
  }
  func.func @transform_4(%arg0: i32) -> (i32, i32, i32) {
    %c0_i32 = arith.constant 0 : i32
    %c0_i32_0 = arith.constant 0 : i32
    %c0_i32_1 = arith.constant 0 : i32
    return %arg0, %c0_i32, %c0_i32_0 : i32, i32, i32
  }
}

module attributes {stable_mosaic.version = 11 : i64} {
  func.func @_score_kernel(%arg0: i32, %arg1: memref<1x2x128xf32, #tpu.memory_space<vmem>>, %arg2: memref<1x192x128xbf16, #tpu.memory_space<vmem>>, %arg3: memref<1x2x192xf32, #tpu.memory_space<vmem>>) attributes {dimension_semantics = [#tpu.dimension_semantics<parallel>], iteration_bounds = array<i64: 2>, scalar_prefetch = 0 : i64, scratch_operands = 0 : i64, tpu.core_type = #tpu.core_type<tc>, window_params = [{transform_indices = @transform_0, window_bounds = array<i64: 1, 2, 128>}, {transform_indices = @transform_1, window_bounds = array<i64: 1, 192, 128>}, {transform_indices = @transform_2, window_bounds = array<i64: 1, 2, 192>}]} {
    %c0 = arith.constant 0 : index
    %c0_0 = arith.constant 0 : index
    %c0_1 = arith.constant 0 : index
    %0 = vector.load %arg1[%c0, %c0_0, %c0_1] : memref<1x2x128xf32, #tpu.memory_space<vmem>>, vector<1x2x128xf32>
    %1 = vector.shape_cast %0 : vector<1x2x128xf32> to vector<2x128xf32>
    %2 = arith.truncf %1 : vector<2x128xf32> to vector<2x128xbf16>
    %c0_2 = arith.constant 0 : index
    %c0_3 = arith.constant 0 : index
    %c0_4 = arith.constant 0 : index
    %3 = vector.load %arg2[%c0_2, %c0_3, %c0_4] : memref<1x192x128xbf16, #tpu.memory_space<vmem>>, vector<1x192x128xbf16>
    %4 = vector.shape_cast %3 : vector<1x192x128xbf16> to vector<192x128xbf16>
    %cst = arith.constant dense<0.000000e+00> : vector<2x192xf32>
    %5 = tpu.matmul %2, %4, %cst {dimension_numbers = #tpu.dot_dimension_numbers<[1], [1], [0], [0], [0, 0, 1, 0], [], []>} : vector<2x128xbf16>, vector<192x128xbf16>, vector<2x192xf32> -> vector<2x192xf32>
    %c0_5 = arith.constant 0 : index
    %c0_6 = arith.constant 0 : index
    %c0_7 = arith.constant 0 : index
    %6 = vector.load %arg3[%c0_5, %c0_6, %c0_7] : memref<1x2x192xf32, #tpu.memory_space<vmem>>, vector<1x2x192xf32>
    %7 = vector.shape_cast %6 : vector<1x2x192xf32> to vector<2x192xf32>
    %8 = vector.shape_cast %5 : vector<2x192xf32> to vector<1x2x192xf32>
    tpu.vector_store %arg3[%c0_5, %c0_6, %c0_7], %8 {strides = array<i32>} : memref<1x2x192xf32, #tpu.memory_space<vmem>>, vector<1x2x192xf32>,
    return
  }
  func.func @transform_0(%arg0: i32) -> (i32, i32, i32) {
    %c0_i32 = arith.constant 0 : i32
    %c0_i32_0 = arith.constant 0 : i32
    %c0_i32_1 = arith.constant 0 : i32
    return %arg0, %c0_i32, %c0_i32_0 : i32, i32, i32
  }
  func.func @transform_1(%arg0: i32) -> (i32, i32, i32) {
    %c0_i32 = arith.constant 0 : i32
    %c0_i32_0 = arith.constant 0 : i32
    %c0_i32_1 = arith.constant 0 : i32
    return %arg0, %c0_i32, %c0_i32_0 : i32, i32, i32
  }
  func.func @transform_2(%arg0: i32) -> (i32, i32, i32) {
    %c0_i32 = arith.constant 0 : i32
    %c0_i32_0 = arith.constant 0 : i32
    %c0_i32_1 = arith.constant 0 : i32
    return %arg0, %c0_i32, %c0_i32_0 : i32, i32, i32
  }
}

</mosaic_0001>

<bundles_post_ra>
// kernel: model_forward.5
= control target key start
LH: loop header
LB: loop body
LE: loop exit
PB: predicated region body
PF: predicated region fallthrough
CT: control target
= control target key end

     0   :  { %s455_s9 = smov 0   ;;  %s494_s0 = inlined_call_operand.vmem [shape: f32[2,2,128], index: 0, kind: input, shape index: {}]   ;;  %s495_s1 = inlined_call_operand.vmem [shape: bf16[2,192,128], index: 1, kind: input, shape index: {}]   ;;  %s496_s2 = inlined_call_operand.vmem [shape: f32[2,2,192], index: 2, kind: output, shape index: {}]  }
   0x1 LB: > { %s383_s10 = sadd.s32 4294967295, %s436_s9   ;;  %p387_p0 = scmp.ge.s32.totalorder %s436_s9, 1  ;;  %s436_s9 = sphi %s455_s9, %s12_s9  }
   0x2   : > { %p121_p1 = scmp.lt.s32.totalorder %s436_s9, 3 }
   0x4   : > { %p122_p2 = pnand %p387_p0, %p121_p1 }
   0x5   : > { %p147_p3 = scmp.lt.s32.totalorder (!%p122_p2), %s383_s10, 1 }
   0x6   : > { %125 = sbr.rel (%p122_p2) target bundleno = 311 (0x137), region = 28 }
   0xb   : > { %v438_v0 = vmov 0   ;;  %s498_s10 = smov (!%p147_p3, %s383_s10), 1  ;;  %v439_v15 = vmov 1983009808   ;;  %v307_v17 = vlaneseq  ;;  %vm312_vm0 = vcmask 1041408  }
   0xc   : > { %260 = vmatprep.subr.bf16.mxu0 %v438_v0  ;;  %292 = vmatprep.mubr.bf16.mxu0 %v438_v0  ;;  %s407_s11 = smul.u32 96, %s498_s10  ;;  %s388_s15 = sshll.u32 %s498_s10, 1  ;;  %v305_v16 = vunpack.c.l.s4 %v439_v15  ;;  %vm313_vm1 = vcmask 519170  }
   0xd   : > { %s150_s18 = scalar_lea.vmem %s494_s0, %s388_s15  ;;  %v308_v19 = vshrl.u32 %v307_v17, 7  ;;  %s406_s19 = sshll.u32 %s498_s10, 2  ;;  %vm314_vm2 = vmor %vm313_vm1, %vm312_vm0 }
   0xe   : > { %s469_s14 = scalar_lea.vmem %s495_s1, %s407_s11  ;;  %v162_v13 = vld [vmem:[%s150_s18] sm:$0x3]  ;;  %v306_v18 = vunpack.c.0.s8 %v305_v16  ;;  %s160_s22 = scalar_lea.vmem %s496_s2, %s406_s19 }
   0xf   : > { %v418_v1 = vld [vmem:[%s469_s14 + $0x38] sm:$0xff]   ;;  %v419_v2 = vld [vmem:[%s469_s14 + $0x30] sm:$0xff]   ;;  %v420_v3 = vld [vmem:[%s469_s14 + $0x28] sm:$0xff]   ;;  %v163_v14 = vpack.c.bf16 %v162_v13, %v162_v13 }
  0x10   : > { %261 = vmatpush1.bf16.xpose.msra.mxu0 %v418_v1  ;;  %v421_v4 = vld [vmem:[%s469_s14 + $0x20] sm:$0xff]   ;;  %v422_v5 = vld [vmem:[%s469_s14 + $0x18] sm:$0xff]   ;;  %v423_v6 = vld [vmem:[%s469_s14 + $0x10] sm:$0xff]   ;;  %v309_v21 = vsub.s32 %v306_v18, %v308_v19 }
  0x11   : > { %262 = vmatprep.subr.bf16.mxu0 %v438_v0  ;;  %v424_v7 = vld [vmem:[%s469_s14 + $0x8] sm:$0xff]   ;;  %v425_v8 = vld [vmem:[%s469_s14] sm:$0xff]   ;;  %v426_v9 = vld [vmem:[%s469_s14 + $0x58] sm:$0xff]  }
  0x12   : > { %v427_v10 = vld [vmem:[%s469_s14 + $0x50] sm:$0xff]   ;;  %v428_v11 = vld [vmem:[%s469_s14 + $0x48] sm:$0xff]   ;;  %v429_v12 = vld [vmem:[%s469_s14 + $0x40] sm:$0xff]  }
  0x18   : > { %263 = vmatpush1.bf16.xpose.msra.mxu0 %v419_v2 }
  0x19   : > { %264 = vmatprep.subr.bf16.mxu0 %v438_v0 }
  0x20   : > { %265 = vmatpush1.bf16.xpose.msra.mxu0 %v420_v3 }
  0x21   : > { %266 = vmatprep.subr.bf16.mxu0 %v438_v0 }
  0x28   : > { %267 = vmatpush1.bf16.xpose.msra.mxu0 %v421_v4 }
  0x29   : > { %268 = vmatprep.subr.bf16.mxu0 %v438_v0 }
  0x30   : > { %269 = vmatpush1.bf16.xpose.msra.mxu0 %v422_v5 }
  0x31   : > { %270 = vmatprep.subr.bf16.mxu0 %v438_v0 }
  0x38   : > { %271 = vmatpush1.bf16.xpose.msra.mxu0 %v423_v6 }
  0x39   : > { %272 = vmatprep.subr.bf16.mxu0 %v438_v0 }
  0x40   : > { %273 = vmatpush1.bf16.xpose.msra.mxu0 %v424_v7 }
  0x41   : > { %274 = vmatprep.subr.bf16.mxu0 %v438_v0 }
  0x48   : > { %275 = vmatpush1.bf16.xpose.msra.mxu0 %v425_v8 }
  0x49   : > { %284 = vmatprep.subr.bf16.mxu0 %v438_v0 }
  0x50   : > { %285 = vmatpush2.bf16.xpose.msra.mxu0 %v426_v9 }
  0x51   : > { %286 = vmatprep.subr.bf16.mxu0 %v438_v0 }
  0x58   : > { %287 = vmatpush2.bf16.xpose.msra.mxu0 %v427_v10 }
  0x59   : > { %288 = vmatprep.subr.bf16.mxu0 %v438_v0 }
  0x60   : > { %289 = vmatpush2.bf16.xpose.msra.mxu0 %v428_v11 }
  0x61   : > { %290 = vmatprep.subr.bf16.mxu0 %v438_v0 }
  0x68   : > { %291 = vmatpush2.bf16.xpose.msra.mxu0 %v429_v12 }
  0x6f   : > { %293 = vmatmul.mubr.bf16.vlgmr.msra.gmra.mxu0 %v163_v14 }
 0x12f   : > { %v294_v20 = vpop.f32.mrf.mxu0 }
 0x131   : > { %v296_v22 = vpop.f32.mrf.mxu0 }
 0x132   : > { %v303_v23 = vcombine.low %v294_v20, %v296_v22 }
 0x133   : > { %v298_v24 = vpop.f32.mrf.mxu0 }
 0x134   : > { %v310_v25 = vrot.slane %v303_v23, %v309_v21 }
 0x135   : > { %v299_v26 = vpop.f32.mrf.mxu0 }
 0x136   : > { %315 = vst.msk [vmem:[%s160_s22] sm:$0xf] %vm314_vm2, %v310_v25 }
 0x137 PF: > { %s12_s9 = sadd.s32 1, %s436_s9  }
 0x138   : > { %p9_p4 = scmp.ge.s32.totalorder %s12_s9, 4  }
 0x13a   :  { %11 = sbr.rel (!%p9_p4) target bundleno = 1 (0x1), region = 61 }

// kernel: model_forward.4
= control target key start
LH: loop header
LB: loop body
LE: loop exit
PB: predicated region body
PF: predicated region fallthrough
CT: control target
= control target key end

     0   :  { %s949_s15 = smov 0   ;;  %s1069_s0 = inlined_call_operand.vmem [shape: f32[2,2,4], index: 0, kind: input, shape index: {}]   ;;  %s1070_s1 = inlined_call_operand.vmem [shape: bf16[2,256,4], index: 1, kind: input, shape index: {}]   ;;  %s1071_s2 = inlined_call_operand.vmem [shape: bf16[4,128], index: 2, kind: input, shape index: {}]   ;;  %s1072_s3 = inlined_call_operand.vmem [shape: f32[1,128], index: 3, kind: input, shape index: {}]   ;;  %s1073_s4 = inlined_call_operand.vmem [shape: f32[2,2,128], index: 4, kind: output, shape index: {}]  }
   0x1 LB: > { %s777_s16 = sadd.s32 4294967295, %s920_s15   ;;  %p781_p0 = scmp.ge.s32.totalorder %s920_s15, 1  ;;  %s920_s15 = sphi %s949_s15, %s14_s15  }
   0x2   : > { %p171_p1 = scmp.lt.s32.totalorder %s920_s15, 3 }
   0x4   : > { %p172_p2 = pnand %p781_p0, %p171_p1 }
   0x5   : > { %p200_p3 = scmp.lt.s32.totalorder (!%p172_p2), %s777_s16, 1 }
   0x6   : > { %175 = sbr.rel (%p172_p2) target bundleno = 644 (0x284), region = 36 }
   0xb   : > { %v246_v0 = vld [vmem:[%s1071_s2] sm:$0x3]  ;;  %vm383_vm0 = vcmask 1041408   ;;  %s1075_s16 = smov (!%p200_p3, %s777_s16), 1  ;;  %vm334_vm1 = vcmask 31744   ;;  %v922_v18 = vmov 0.0  }
   0xc   : > { %884 = vmatprep.subr.msk.bf16.mxu0 %vm383_vm0, %v246_v0  ;;  %v385_v1 = vsel %vm383_vm0, %v246_v0, 0  ;;  %885 = vmatprep.subr.msk.bf16.mxu1 %vm383_vm0, %v246_v0  ;;  %s822_s19 = sshll.u32 %s1075_s16, 7  ;;  %vm923_vm2 = vmmov 0   ;;  %v1006_v21 = vld [vmem:[%s1072_s3] ss:$0 sm:$0xff]  ;;  %s782_s25 = sshll.u32 %s1075_s16, 1 }
   0xd   : > { %843 = vmatpush3.bf16.msra.mxu0 %v385_v1  ;;  %883 = vmatpush3.bf16.msra.mxu1 %v385_v1  ;;  %s969_s22 = scalar_lea.vmem %s1070_s1, %s822_s19  ;;  %vm651_vm3 = vcmask 1041409   ;;  %vm653_vm4 = vcmask 1042434   ;;  %vm655_vm5 = vcmask 1043459   ;;  %s203_s28 = scalar_lea.vmem %s1069_s0, %s782_s25 }
   0xe   : > { %v896_v2 = vld [vmem:[%s969_s22] sm:$0xff]   ;;  %v897_v3 = vld [vmem:[%s969_s22 + $0x8] sm:$0xff]   ;;  %v898_v4 = vld [vmem:[%s969_s22 + $0x10] sm:$0xff]   ;;  %876 = vmatprep.subr.bf16.mxu1 %v922_v18  ;;  %s212_s5 = scalar_lea.vmem %s1073_s4, %s782_s25 }
   0xf   : > { %844 = vmatprep.mubr.msk.bf16.mxu0 %vm334_vm1, %v896_v2  ;;  %v900_v5 = vld [vmem:[%s969_s22 + $0x50] sm:$0xff]   ;;  %v901_v6 = vld [vmem:[%s969_s22 + $0x58] sm:$0xff]   ;;  %v902_v8 = vld [vmem:[%s969_s22 + $0x20] sm:$0xff]  }
  0x10   : > { %845 = vmatmul.mubr.msk.bf16.vlgmr.msra.gmra.mxu0 %vm334_vm1, %v897_v3  ;;  %v899_v7 = vld [vmem:[%s969_s22 + $0x18] sm:$0xff]   ;;  %864 = vmatprep.mubr.msk.bf16.mxu1 %vm334_vm1, %v900_v5  ;;  %v904_v9 = vld [vmem:[%s969_s22 + $0x60] sm:$0xff]   ;;  %v905_v10 = vld [vmem:[%s969_s22 + $0x68] sm:$0xff]  }
  0x11   : > { %848 = vmatprep.mubr.msk.bf16.mxu0 %vm334_vm1, %v898_v4  ;;  %865 = vmatmul.mubr.msk.bf16.vlgmr.msra.gmra.mxu1 %vm334_vm1, %v901_v6  ;;  %v908_v11 = vld [vmem:[%s969_s22 + $0x70] sm:$0xff]   ;;  %v903_v12 = vld [vmem:[%s969_s22 + $0x28] sm:$0xff]   ;;  %v909_v14 = vld [vmem:[%s969_s22 + $0x78] sm:$0xff]  }
  0x12   : > { %868 = vmatprep.mubr.msk.bf16.mxu1 %vm334_vm1, %v904_v9  ;;  %v906_v13 = vld [vmem:[%s969_s22 + $0x30] sm:$0xff]   ;;  %v907_v15 = vld [vmem:[%s969_s22 + $0x38] sm:$0xff]   ;;  %v910_v16 = vld [vmem:[%s969_s22 + $0x40] sm:$0xff]  }
  0x13   : > { %v911_v17 = vld [vmem:[%s969_s22 + $0x48] sm:$0xff]  }
  0x18   : > { %849 = vmatmul.mubr.msk.bf16.gmra.mxu0 %vm334_vm1, %v899_v7 }
  0x19   : > { %852 = vmatprep.mubr.msk.bf16.mxu0 %vm334_vm1, %v902_v8  ;;  %869 = vmatmul.mubr.msk.bf16.gmra.mxu1 %vm334_vm1, %v905_v10 }
  0x1a   : > { %872 = vmatprep.mubr.msk.bf16.mxu1 %vm334_vm1, %v908_v11 }
  0x20   : > { %853 = vmatmul.mubr.msk.bf16.gmra.mxu0 %vm334_vm1, %v903_v12 }
  0x21   : > { %856 = vmatprep.mubr.msk.bf16.mxu0 %vm334_vm1, %v906_v13  ;;  %873 = vmatmul.mubr.msk.bf16.gmra.mxu1 %vm334_vm1, %v909_v14 }
  0x22   : > { %878 = vmatprep.mubr.msk.bf16.mxu1 %vm923_vm2, %v922_v18 }
  0x28   : > { %857 = vmatmul.mubr.msk.bf16.gmra.mxu0 %vm334_vm1, %v907_v15 }
  0x29   : > { %860 = vmatprep.mubr.msk.bf16.mxu0 %vm334_vm1, %v910_v16 }
  0x30   : > { %861 = vmatmul.mubr.msk.bf16.gmra.mxu0 %vm334_vm1, %v911_v17 }
  0xd0   : > { %v846_v19 = vpop.f32.mrf.mxu0 }
  0xd1   : > { %v1008_v23 = vpop.f32.mrf.mxu1  ;;  %v430_v30 = vadd.f32 %v846_v19, %v1006_v21 }
  0xd2   : > { %v421_v20 = vpop.f32.mrf.mxu0 }
  0xd3   : > { %v422_v24 = vadd.f32 %v1006_v21, %v421_v20  ;;  %v1011_v26 = vpop.f32.mrf.mxu1  ;;  %v550_v38 = vmax.f32 %v430_v30, 0.0 }
  0xd4   : > { %v847_v22 = vpop.f32.mrf.mxu0 }
  0xd5   : > { %v1014_v29 = vpop.f32.mrf.mxu1  ;;  %v548_v31 = vmax.f32 %v422_v24, 0.0  ;;  %v433_v39 = vadd.f32 %v847_v22, %v1006_v21 }
  0xd6   : > { %v424_v25 = vpop.f32.mrf.mxu0 }
  0xd7   : > { %v425_v27 = vadd.f32 %v1006_v21, %v424_v25  ;;  %v1017_v34 = vpop.f32.mrf.mxu1  ;;  %v551_v46 = vmax.f32 %v433_v39, 0.0 }
  0xd8   : > { %v850_v28 = vpop.f32.mrf.mxu0 }
  0xd9   : > { %v549_v32 = vmax.f32 %v425_v27, 0.0  ;;  %v870_v37 = vpop.f32.mrf.mxu1  ;;  %v446_v9 = vadd.f32 %v850_v28, %v1006_v21 }
  0xda   : > { %v437_v33 = vpop.f32.mrf.mxu0  ;;  %v526_v48 = vadd.f32 %v870_v37, %v1006_v21 }
  0xdb   : > { %v580_v35 = vadd.f32 %v549_v32, %v548_v31  ;;  %v517_v41 = vpop.f32.mrf.mxu1  ;;  %v438_v47 = vadd.f32 %v1006_v21, %v437_v33  ;;  %v554_v28 = vmax.f32 %v446_v9, 0.0 }
  0xdc   : > { %v851_v36 = vpop.f32.mrf.mxu0  ;;  %v518_v44 = vadd.f32 %v1006_v21, %v517_v41  ;;  %v574_v60 = vmax.f32 %v526_v48, 0.0 }
  0xdd   : > { %v581_v42 = vadd.f32 %v580_v35, %v550_v38  ;;  %v871_v45 = vpop.f32.mrf.mxu1  ;;  %v552_v58 = vmax.f32 %v438_v47, 0.0  ;;  %v449_v30 = vadd.f32 %v851_v36, %v1006_v21 }
  0xde   : > { %v440_v40 = vpop.f32.mrf.mxu0  ;;  %v572_v53 = vmax.f32 %v518_v44, 0.0  ;;  %v529_v55 = vadd.f32 %v871_v45, %v1006_v21 }
  0xdf   : > { %v520_v50 = vpop.f32.mrf.mxu1  ;;  %v582_v51 = vadd.f32 %v581_v42, %v551_v46  ;;  %v441_v52 = vadd.f32 %v1006_v21, %v440_v40 }
  0xe0   : > { %v854_v43 = vpop.f32.mrf.mxu0  ;;  %v521_v56 = vadd.f32 %v1006_v21, %v520_v50  ;;  %v575_v4 = vmax.f32 %v529_v55, 0.0 }
  0xe1   : > { %v874_v57 = vpop.f32.mrf.mxu1  ;;  %v583_v0 = vadd.f32 %v582_v51, %v552_v58  ;;  %v462_v1 = vadd.f32 %v854_v43, %v1006_v21  ;;  %v553_v3 = vmax.f32 %v441_v52, 0.0 }
  0xe2   : > { %v453_v49 = vpop.f32.mrf.mxu0  ;;  %v573_v62 = vmax.f32 %v521_v56, 0.0  ;;  %v542_v14 = vadd.f32 %v874_v57, %v1006_v21 }
  0xe3   : > { %v454_v59 = vadd.f32 %v1006_v21, %v453_v49  ;;  %v533_v63 = vpop.f32.mrf.mxu1  ;;  %v558_v18 = vmax.f32 %v462_v1, 0.0  ;;  %v584_v22 = vadd.f32 %v583_v0, %v553_v3  ;;  %v555_v49 = vmax.f32 %v449_v30, 0.0 }
  0xe4   : > { %v855_v54 = vpop.f32.mrf.mxu0  ;;  %v619_v5 = vadd.f32 %v573_v62, %v572_v53  ;;  %v534_v7 = vadd.f32 %v1006_v21, %v533_v63  ;;  %v578_v33 = vmax.f32 %v542_v14, 0.0 }
  0xe5   : > { %v875_v8 = vpop.f32.mrf.mxu1  ;;  %v556_v10 = vmax.f32 %v454_v59, 0.0  ;;  %v465_v11 = vadd.f32 %v855_v54, %v1006_v21  ;;  %v585_v44 = vadd.f32 %v584_v22, %v554_v28 }
  0xe6   : > { %v456_v61 = vpop.f32.mrf.mxu0  ;;  %v620_v13 = vadd.f32 %v619_v5, %v574_v60  ;;  %v576_v16 = vmax.f32 %v534_v7, 0.0  ;;  %v545_v37 = vadd.f32 %v875_v8, %v1006_v21  ;;  %v502_v7 = vadd.f32 %v1006_v21, %v1011_v26 }
  0xe7   : > { %v457_v2 = vadd.f32 %v1006_v21, %v456_v61  ;;  %v536_v17 = vpop.f32.mrf.mxu1  ;;  %v559_v31 = vmax.f32 %v465_v11, 0.0  ;;  %v586_v55 = vadd.f32 %v585_v44, %v555_v49  ;;  %v513_v26 = vadd.f32 %v1014_v29, %v1006_v21 }
  0xe8   : > { %v858_v6 = vpop.f32.mrf.mxu0  ;;  %v621_v24 = vadd.f32 %v620_v13, %v575_v4  ;;  %v537_v27 = vadd.f32 %v1006_v21, %v536_v17  ;;  %v579_v50 = vmax.f32 %v545_v37, 0.0  ;;  %v510_v17 = vadd.f32 %v1008_v23, %v1006_v21 }
  0xe9   : > { %v557_v12 = vmax.f32 %v457_v2, 0.0  ;;  %v478_v40 = vadd.f32 %v858_v6, %v1006_v21  ;;  %v587_v1 = vrot.slane %v586_v55, 4 }
  0xea   : > { %v469_v15 = vpop.f32.mrf.mxu0  ;;  %v622_v35 = vadd.f32 %v621_v24, %v576_v16  ;;  %v577_v39 = vmax.f32 %v537_v27, 0.0  ;;  %v570_v28 = vmax.f32 %v510_v17, 0.0 }
  0xeb   : > { %v593_v19 = vadd.f32 %v557_v12, %v556_v10  ;;  %v470_v20 = vadd.f32 %v1006_v21, %v469_v15  ;;  %v562_v53 = vmax.f32 %v478_v40, 0.0  ;;  %v588_v11 = vadd.f32 %v587_v1, %v586_v55 }
  0xec   : > { %v859_v25 = vpop.f32.mrf.mxu0  ;;  %v623_v45 = vadd.f32 %v622_v35, %v577_v39  ;;  %v505_v12 = vadd.f32 %v1006_v21, %v1017_v34 }
  0xed   : > { %v594_v32 = vadd.f32 %v593_v19, %v558_v18  ;;  %v560_v41 = vmax.f32 %v470_v20, 0.0  ;;  %v481_v36 = vadd.f32 %v859_v25, %v1006_v21  ;;  %v568_v18 = vmax.f32 %v502_v7, 0.0 }
  0xee   : > { %v472_v38 = vpop.f32.mrf.mxu0  ;;  %v624_v51 = vadd.f32 %v623_v45, %v578_v33  ;;  %v589_v20 = vrot.slane %v588_v11, 2  ;;  %v569_v22 = vmax.f32 %v505_v12, 0.0 }
  0xef   : > { %v595_v42 = vadd.f32 %v594_v32, %v559_v31  ;;  %v473_v43 = vadd.f32 %v1006_v21, %v472_v38  ;;  %v563_v57 = vmax.f32 %v481_v36, 0.0  ;;  %v571_v31 = vmax.f32 %v513_v26, 0.0 }
  0xf0   : > { %v862_v46 = vpop.f32.mrf.mxu0  ;;  %v625_v60 = vadd.f32 %v624_v51, %v579_v50  ;;  %v590_v34 = vadd.f32 %v589_v20, %v588_v11 }
  0xf1   : > { %v596_v47 = vadd.f32 %v595_v42, %v560_v41  ;;  %v561_v48 = vmax.f32 %v473_v43, 0.0  ;;  %v494_v63 = vadd.f32 %v862_v46, %v1006_v21 }
  0xf2   : > { %v485_v52 = vpop.f32.mrf.mxu0  ;;  %v626_v6 = vrot.slane %v625_v60, 4  ;;  %v591_v38 = vrot.slane %v590_v34, 1 }
  0xf3   : > { %v597_v54 = vadd.f32 %v596_v47, %v561_v48  ;;  %v486_v59 = vadd.f32 %v1006_v21, %v485_v52  ;;  %v566_v9 = vmax.f32 %v494_v63, 0.0 }
  0xf4   : > { %v863_v56 = vpop.f32.mrf.mxu0  ;;  %v627_v16 = vadd.f32 %v626_v6, %v625_v60  ;;  %v592_v42 = vadd.f32 %v591_v38, %v590_v34  ;;  %v637_v60 = vld [vmem:[%s203_s28] sm:$0x3] }
  0xf5   : > { %v598_v58 = vadd.f32 %v597_v54, %v562_v53  ;;  %v564_v3 = vmax.f32 %v486_v59, 0.0  ;;  %v497_v4 = vadd.f32 %v863_v56, %v1006_v21  ;;  %v638_v63 = vpack.c.bf16 %v637_v60, %v637_v60 }
  0xf6   : > { %v488_v61 = vpop.f32.mrf.mxu0  ;;  %v628_v27 = vrot.slane %v627_v16, 2  ;;  %v633_v45 = vmul.f32 0.015625, %v592_v42 }
  0xf7   : > { %v599_v62 = vadd.f32 %v598_v58, %v563_v57  ;;  %v489_v0 = vadd.f32 %v1006_v21, %v488_v61  ;;  %v567_v13 = vmax.f32 %v497_v4, 0.0 }
  0xf8   : > { %v629_v35 = vadd.f32 %v628_v27, %v627_v16  ;;  %v639_v49 = vpack.c.bf16 %v633_v45, %v633_v45 }
  0xf9   : > { %v600_v2 = vrot.slane %v599_v62, 4  ;;  %v565_v5 = vmax.f32 %v489_v0, 0.0 }
  0xfa   : > { %v630_v40 = vrot.slane %v629_v35, 1  ;;  %v647_v54 = vunpack.c.l.b16 %v639_v49 }
  0xfb   : > { %v601_v8 = vadd.f32 %v600_v2, %v599_v62  ;;  %v606_v10 = vadd.f32 %v565_v5, %v564_v3 }
  0xfc   : > { %v631_v43 = vadd.f32 %v630_v40, %v629_v35 }
  0xfd   : > { %v607_v14 = vadd.f32 %v606_v10, %v566_v9  ;;  %v602_v15 = vrot.slane %v601_v8, 2 }
  0xfe   : > { %v636_v36 = vmul.f32 0.015625, %v631_v43 }
  0xff   : > { %v608_v19 = vadd.f32 %v607_v14, %v567_v13  ;;  %v603_v25 = vadd.f32 %v602_v15, %v601_v8 }
 0x100   : > { %v642_v52 = vpack.c.bf16 %v636_v36, %v636_v36 }
 0x101   : > { %v609_v24 = vadd.f32 %v608_v19, %v568_v18  ;;  %v604_v33 = vrot.slane %v603_v25, 1 }
 0x102   : > { %v650_v56 = vunpack.c.l.b16 %v642_v52 }
 0x103   : > { %v610_v30 = vadd.f32 %v609_v24, %v569_v22  ;;  %v605_v39 = vadd.f32 %v604_v33, %v603_v25 }
 0x105   : > { %v611_v32 = vadd.f32 %v610_v30, %v570_v28  ;;  %v634_v29 = vmul.f32 0.015625, %v605_v39 }
 0x107   : > { %v612_v37 = vadd.f32 %v611_v32, %v571_v31  ;;  %v640_v47 = vpack.c.bf16 %v634_v29, %v634_v29 }
 0x109   : > { %v613_v23 = vrot.slane %v612_v37, 4  ;;  %v648_v51 = vunpack.c.l.b16 %v640_v47 }
 0x10b   : > { %v614_v41 = vadd.f32 %v613_v23, %v612_v37  ;;  %v652_v57 = vsel %vm651_vm3, %v648_v51, %v647_v54 }
 0x10d   : > { %v615_v21 = vrot.slane %v614_v41, 2 }
 0x10f   : > { %v616_v44 = vadd.f32 %v615_v21, %v614_v41 }
 0x111   : > { %v617_v46 = vrot.slane %v616_v44, 1 }
 0x113   : > { %v618_v48 = vadd.f32 %v617_v46, %v616_v44 }
 0x115   : > { %v635_v50 = vmul.f32 0.015625, %v618_v48 }
 0x117   : > { %v641_v53 = vpack.c.bf16 %v635_v50, %v635_v50 }
 0x119   : > { %v649_v55 = vunpack.c.l.b16 %v641_v53 }
 0x11b   : > { %v654_v58 = vsel %vm653_vm4, %v649_v55, %v652_v57 }
 0x11c   : > { %v656_v59 = vsel %vm655_vm5, %v650_v56, %v654_v58 }
 0x11d   : > { %v657_v61 = vpack.c.b16 %v656_v59, %v656_v59 }
 0x11f   : > { %v662_v62 = vsel %vm383_vm0, %v657_v61, 0 }
 0x120   : > { %877 = vmatpush3.bf16.msra.mxu1 %v662_v62 }
 0x123   : > { %879 = vmatmul.mubr.msk.bf16.vlgmr.msra.gmra.mxu1 %vm334_vm1, %v638_v63 }
 0x1e3   : > { %v698_v0 = vpop.f32.mrf.mxu1 }
 0x1e4   : > { %v704_v1 = vmul.f32 %v698_v0, %v698_v0 }
 0x1e5   : > { %v880_v2 = vpop.f32.mrf.mxu1 }
 0x1e6   : > { %v705_v3 = vsel %vm383_vm0, %v704_v1, 0.0 }
 0x1e7   : > { %706 = vadd.xlane.f32.xlu0 %v705_v3  ;;  %v701_v4 = vpop.f32.mrf.mxu1 }
 0x1e9   : > { %v881_v5 = vpop.f32.mrf.mxu1 }
 0x270   : > { %v707_v6 = vpop.xlane.xlu0 %706 }
 0x271   : > { %v708_v7 = vmax.f32 %v707_v6, 1e-24 }
 0x273   : > { %912 = vrsqrt.f32 %v708_v7 }
 0x280   : > { %v913_v8 = vpop.eup %912 }
 0x281   : > { %v710_v9 = vmul.f32 %v913_v8, %v698_v0 }
 0x283   : > { %711 = vst [vmem:[%s212_s5] sm:$0x3] %v710_v9 }
 0x284 PF: > { %s14_s15 = sadd.s32 1, %s920_s15  }
 0x285   : > { %p11_p4 = scmp.ge.s32.totalorder %s14_s15, 4  }
 0x287   :  { %13 = sbr.rel (!%p11_p4) target bundleno = 1 (0x1), region = 69 }

// kernel: model_forward.3
= control target key start
LH: loop header
LB: loop body
LE: loop exit
PB: predicated region body
PF: predicated region fallthrough
CT: control target
= control target key end

     0   :  { %s1340_s21 = smov 0   ;;  %s1519_s0 = inlined_call_operand.vmem [shape: bf16[384,4], index: 0, kind: input, shape index: {}]   ;;  %s1520_s1 = inlined_call_operand.vmem [shape: bf16[4,128], index: 1, kind: input, shape index: {}]   ;;  %s1521_s2 = inlined_call_operand.vmem [shape: f32[1,128], index: 2, kind: input, shape index: {}]   ;;  %s1522_s3 = inlined_call_operand.vmem [shape: bf16[128,128], index: 3, kind: input, shape index: {}]   ;;  %s1523_s4 = inlined_call_operand.vmem [shape: f32[1,128], index: 4, kind: input, shape index: {}]   ;;  %s1524_s5 = inlined_call_operand.vmem [shape: bf16[384,128], index: 5, kind: output, shape index: {0}]   ;;  %s1525_s6 = inlined_call_operand.vmem [shape: f32[384,128], index: 6, kind: output, shape index: {1}]  }
   0x1 LB: > { %s990_s22 = sadd.s32 4294967295, %s1303_s21   ;;  %p994_p0 = scmp.ge.s32.totalorder %s1303_s21, 1  ;;  %s1303_s21 = sphi %s1340_s21, %s17_s21  }
   0x2   : > { %p216_p1 = scmp.lt.s32.totalorder %s1303_s21, 3 }
   0x4   : > { %p217_p2 = pnand %p994_p0, %p216_p1 }
   0x5   : > { %s251_s25 = smul.u32 (!%p217_p2), 24, %s990_s22 }
   0x6   : > { %220 = sbr.rel (%p217_p2) target bundleno = 464 (0x1d0), region = 40 }
   0x7   : > { %p252_p3 = scmp.lt.s32.totalorder (!%p217_p2), %s251_s25, 47 }
   0xb   : > { %v294_v0 = vld [vmem:[%s1520_s1] sm:$0x3]  ;;  %vm399_vm0 = vcmask 1041408   ;;  %v1289_v1 = vld [vmem:[%s1522_s3 + $0x38] sm:$0xff]   ;;  %v1290_v3 = vld [vmem:[%s1522_s3 + $0x30] sm:$0xff]   ;;  %s1527_s25 = smov (!%p252_p3, %s251_s25), 47 }
   0xc   : > { %1268 = vmatprep.subr.msk.bf16.mxu0 %vm399_vm0, %v294_v0  ;;  %v401_v2 = vsel %vm399_vm0, %v294_v0, 0  ;;  %1252 = vmatprep.subr.bf16.mxu1 %v1289_v1  ;;  %vm362_vm1 = vcmask 31744   ;;  %s995_s30 = sshll.u32 %s1527_s25, 2  ;;  %v1291_v4 = vld [vmem:[%s1522_s3 + $0x28] sm:$0xff]   ;;  %v1292_v8 = vld [vmem:[%s1522_s3 + $0x20] sm:$0xff]   ;;  %v1293_v9 = vld [vmem:[%s1522_s3 + $0x18] sm:$0xff]  }
   0xd   : > { %1187 = vmatpush3.bf16.msra.mxu0 %v401_v2  ;;  %1260 = vmatpush3.bf16.msra.mxu1 %v1289_v1  ;;  %s1368_s11 = scalar_lea.vmem %s1519_s0, %s995_s30  ;;  %v1294_v19 = vld [vmem:[%s1522_s3 + $0x10] sm:$0xff]   ;;  %v1295_v20 = vld [vmem:[%s1522_s3 + $0x8] sm:$0xff]   ;;  %v1296_v21 = vld [vmem:[%s1522_s3] sm:$0xff]   ;;  %s1423_s28 = scalar_lea.vmem %s1524_s5, %s995_s30 }
   0xe   : > { %1212 = vmatprep.subr.bf16.mxu0 %v1289_v1  ;;  %1253 = vmatprep.subr.bf16.mxu1 %v1290_v3  ;;  %v1277_v5 = vld [vmem:[%s1368_s11] sm:$0xff]   ;;  %v1278_v6 = vld [vmem:[%s1368_s11 + $0x8] sm:$0xff]   ;;  %v1279_v7 = vld [vmem:[%s1368_s11 + $0x10] sm:$0xff]   ;;  %s997_s29 = sshll.u32 %s1527_s25, 3 }
   0xf   : > { %1188 = vmatprep.mubr.msk.bf16.mxu0 %vm362_vm1, %v1277_v5  ;;  %v1280_v10 = vld [vmem:[%s1368_s11 + $0x18] sm:$0xff]   ;;  %v1281_v11 = vld [vmem:[%s1368_s11 + $0x20] sm:$0xff]   ;;  %v1282_v12 = vld [vmem:[%s1368_s11 + $0x28] sm:$0xff]   ;;  %s1466_s10 = scalar_lea.vmem %s1525_s6, %s997_s29 }
  0x10   : > { %1189 = vmatmul.mubr.msk.bf16.vlgmr.msra.gmra.mxu0 %vm362_vm1, %v1278_v6  ;;  %v1283_v13 = vld [vmem:[%s1368_s11 + $0x30] sm:$0xff]   ;;  %v1284_v14 = vld [vmem:[%s1368_s11 + $0x38] sm:$0xff]   ;;  %v1285_v15 = vld [vmem:[%s1368_s11 + $0x40] sm:$0xff]  }
  0x11   : > { %1261 = vmatpush3.bf16.msra.mxu1 %v1290_v3  ;;  %1192 = vmatprep.mubr.msk.bf16.mxu0 %vm362_vm1, %v1279_v7  ;;  %v1286_v16 = vld [vmem:[%s1368_s11 + $0x48] sm:$0xff]   ;;  %v1287_v17 = vld [vmem:[%s1368_s11 + $0x50] sm:$0xff]   ;;  %v1288_v18 = vld [vmem:[%s1368_s11 + $0x58] sm:$0xff]  }
  0x12   : > { %1254 = vmatprep.subr.bf16.mxu1 %v1291_v4  ;;  %1213 = vmatpush3.bf16.msra.mxu0 %v1289_v1  ;;  %v1412_v23 = vld [vmem:[%s1521_s2] ss:$0 sm:$0xff] }
  0x13   : > { %1214 = vmatprep.subr.bf16.mxu0 %v1290_v3 }
  0x15   : > { %1262 = vmatpush3.bf16.msra.mxu1 %v1291_v4 }
  0x16   : > { %1255 = vmatprep.subr.bf16.mxu1 %v1292_v8  ;;  %1215 = vmatpush3.bf16.msra.mxu0 %v1290_v3 }
  0x17   : > { %1216 = vmatprep.subr.bf16.mxu0 %v1291_v4 }
  0x18   : > { %1193 = vmatmul.mubr.msk.bf16.gmra.mxu0 %vm362_vm1, %v1280_v10 }
  0x19   : > { %1263 = vmatpush3.bf16.msra.mxu1 %v1292_v8  ;;  %1196 = vmatprep.mubr.msk.bf16.mxu0 %vm362_vm1, %v1281_v11 }
  0x1a   : > { %1256 = vmatprep.subr.bf16.mxu1 %v1293_v9  ;;  %1217 = vmatpush3.bf16.msra.mxu0 %v1291_v4 }
  0x1b   : > { %1218 = vmatprep.subr.bf16.mxu0 %v1292_v8 }
  0x1d   : > { %1264 = vmatpush3.bf16.msra.mxu1 %v1293_v9 }
  0x1e   : > { %1219 = vmatpush3.bf16.msra.mxu0 %v1292_v8  ;;  %1257 = vmatprep.subr.bf16.mxu1 %v1294_v19 }
  0x1f   : > { %1220 = vmatprep.subr.bf16.mxu0 %v1293_v9 }
  0x20   : > { %1197 = vmatmul.mubr.msk.bf16.gmra.mxu0 %vm362_vm1, %v1282_v12 }
  0x21   : > { %1200 = vmatprep.mubr.msk.bf16.mxu0 %vm362_vm1, %v1283_v13  ;;  %1265 = vmatpush3.bf16.msra.mxu1 %v1294_v19 }
  0x22   : > { %1221 = vmatpush3.bf16.msra.mxu0 %v1293_v9  ;;  %1258 = vmatprep.subr.bf16.mxu1 %v1295_v20 }
  0x23   : > { %1222 = vmatprep.subr.bf16.mxu0 %v1294_v19 }
  0x25   : > { %1266 = vmatpush3.bf16.msra.mxu1 %v1295_v20 }
  0x26   : > { %1223 = vmatpush3.bf16.msra.mxu0 %v1294_v19  ;;  %1259 = vmatprep.subr.bf16.mxu1 %v1296_v21 }
  0x27   : > { %1224 = vmatprep.subr.bf16.mxu0 %v1295_v20 }
  0x28   : > { %1201 = vmatmul.mubr.msk.bf16.gmra.mxu0 %vm362_vm1, %v1284_v14 }
  0x29   : > { %1204 = vmatprep.mubr.msk.bf16.mxu0 %vm362_vm1, %v1285_v15  ;;  %1267 = vmatpush3.bf16.msra.mxu1 %v1296_v21 }
  0x2a   : > { %1225 = vmatpush3.bf16.msra.mxu0 %v1295_v20 }
  0x2b   : > { %1226 = vmatprep.subr.bf16.mxu0 %v1296_v21 }
  0x2e   : > { %1227 = vmatpush3.bf16.msra.mxu0 %v1296_v21 }
  0x30   : > { %1205 = vmatmul.mubr.msk.bf16.gmra.mxu0 %vm362_vm1, %v1286_v16 }
  0x31   : > { %1208 = vmatprep.mubr.msk.bf16.mxu0 %vm362_vm1, %v1287_v17 }
  0x38   : > { %1209 = vmatmul.mubr.msk.bf16.gmra.mxu0 %vm362_vm1, %v1288_v18 }
  0xd0   : > { %v1190_v22 = vpop.f32.mrf.mxu0 }
  0xd1   : > { %v446_v25 = vadd.f32 %v1190_v22, %v1412_v23 }
  0xd2   : > { %v437_v24 = vpop.f32.mrf.mxu0 }
  0xd3   : > { %v438_v27 = vadd.f32 %v1412_v23, %v437_v24  ;;  %v534_v30 = vmax.f32 %v446_v25, 0.0 }
  0xd4   : > { %v1191_v26 = vpop.f32.mrf.mxu0 }
  0xd5   : > { %v449_v28 = vadd.f32 %v1191_v26, %v1412_v23  ;;  %v532_v34 = vmax.f32 %v438_v27, 0.0 }
  0xd6   : > { %v440_v29 = vpop.f32.mrf.mxu0 }
  0xd7   : > { %v535_v31 = vmax.f32 %v449_v28, 0.0  ;;  %v441_v32 = vadd.f32 %v1412_v23, %v440_v29 }
  0xd8   : > { %v1194_v33 = vpop.f32.mrf.mxu0 }
  0xd9   : > { %v557_v35 = vpack.c.bf16 %v535_v31, %v534_v30  ;;  %v533_v36 = vmax.f32 %v441_v32, 0.0  ;;  %v462_v39 = vadd.f32 %v1194_v33, %v1412_v23 }
  0xda   : > { %v453_v37 = vpop.f32.mrf.mxu0 }
  0xdb   : > { %1142 = vst [vmem:[%s1423_s28 + $0x8] sm:$0xff] %v557_v35   ;;  %v556_v38 = vpack.c.bf16 %v533_v36, %v532_v34  ;;  %v454_v41 = vadd.f32 %v1412_v23, %v453_v37  ;;  %v538_v44 = vmax.f32 %v462_v39, 0.0 }
  0xdc   : > { %v1195_v40 = vpop.f32.mrf.mxu0 }
  0xdd   : > { %1086 = vst [vmem:[%s1423_s28] sm:$0xff] %v556_v38   ;;  %v465_v42 = vadd.f32 %v1195_v40, %v1412_v23  ;;  %1228 = vmatprep.mubr.bf16.mxu0 %v556_v38  ;;  %v536_v48 = vmax.f32 %v454_v41, 0.0 }
  0xde   : > { %v456_v43 = vpop.f32.mrf.mxu0  ;;  %1229 = vmatmul.mubr.bf16.vlgmr.msra.gmra.mxu0 %v557_v35 }
  0xdf   : > { %v539_v45 = vmax.f32 %v465_v42, 0.0  ;;  %v457_v46 = vadd.f32 %v1412_v23, %v456_v43 }
  0xe0   : > { %v1198_v47 = vpop.f32.mrf.mxu0 }
  0xe1   : > { %v559_v49 = vpack.c.bf16 %v539_v45, %v538_v44  ;;  %v537_v50 = vmax.f32 %v457_v46, 0.0  ;;  %v478_v52 = vadd.f32 %v1198_v47, %v1412_v23  ;;  %v1461_v44 = vld [vmem:[%s1523_s4] ss:$0 sm:$0xff] }
  0xe2   : > { %v469_v51 = vpop.f32.mrf.mxu0 }
  0xe3   : > { %1144 = vst [vmem:[%s1423_s28 + $0x18] sm:$0xff] %v559_v49   ;;  %v558_v53 = vpack.c.bf16 %v537_v50, %v536_v48  ;;  %v470_v55 = vadd.f32 %v1412_v23, %v469_v51  ;;  %v542_v58 = vmax.f32 %v478_v52, 0.0 }
  0xe4   : > { %v1199_v54 = vpop.f32.mrf.mxu0 }
  0xe5   : > { %v481_v56 = vadd.f32 %v1199_v54, %v1412_v23  ;;  %1143 = vst [vmem:[%s1423_s28 + $0x10] sm:$0xff] %v558_v53   ;;  %1232 = vmatprep.mubr.bf16.mxu1 %v558_v53  ;;  %v540_v62 = vmax.f32 %v470_v55, 0.0 }
  0xe6   : > { %v472_v57 = vpop.f32.mrf.mxu0  ;;  %1233 = vmatmul.mubr.bf16.vlgmr.msra.gmra.mxu1 %v559_v49 }
  0xe7   : > { %v543_v59 = vmax.f32 %v481_v56, 0.0  ;;  %v473_v60 = vadd.f32 %v1412_v23, %v472_v57 }
  0xe8   : > { %v1202_v61 = vpop.f32.mrf.mxu0 }
  0xe9   : > { %v561_v63 = vpack.c.bf16 %v543_v59, %v542_v58  ;;  %v541_v0 = vmax.f32 %v473_v60, 0.0  ;;  %v494_v3 = vadd.f32 %v1202_v61, %v1412_v23 }
  0xea   : > { %v485_v1 = vpop.f32.mrf.mxu0 }
  0xeb   : > { %1146 = vst [vmem:[%s1423_s28 + $0x28] sm:$0xff] %v561_v63   ;;  %v560_v2 = vpack.c.bf16 %v541_v0, %v540_v62  ;;  %v486_v5 = vadd.f32 %v1412_v23, %v485_v1  ;;  %v546_v8 = vmax.f32 %v494_v3, 0.0 }
  0xec   : > { %v1203_v4 = vpop.f32.mrf.mxu0 }
  0xed   : > { %1145 = vst [vmem:[%s1423_s28 + $0x20] sm:$0xff] %v560_v2   ;;  %v497_v6 = vadd.f32 %v1203_v4, %v1412_v23  ;;  %1236 = vmatprep.mubr.bf16.mxu1 %v560_v2  ;;  %v544_v12 = vmax.f32 %v486_v5, 0.0 }
  0xee   : > { %v488_v7 = vpop.f32.mrf.mxu0  ;;  %1237 = vmatmul.mubr.bf16.gmra.mxu1 %v561_v63 }
  0xef   : > { %v547_v9 = vmax.f32 %v497_v6, 0.0  ;;  %v489_v10 = vadd.f32 %v1412_v23, %v488_v7 }
  0xf0   : > { %v1206_v11 = vpop.f32.mrf.mxu0 }
  0xf1   : > { %v563_v13 = vpack.c.bf16 %v547_v9, %v546_v8  ;;  %v545_v14 = vmax.f32 %v489_v10, 0.0  ;;  %v510_v17 = vadd.f32 %v1206_v11, %v1412_v23 }
  0xf2   : > { %v501_v15 = vpop.f32.mrf.mxu0 }
  0xf3   : > { %1148 = vst [vmem:[%s1423_s28 + $0x38] sm:$0xff] %v563_v13   ;;  %v562_v16 = vpack.c.bf16 %v545_v14, %v544_v12  ;;  %v502_v19 = vadd.f32 %v1412_v23, %v501_v15  ;;  %v550_v22 = vmax.f32 %v510_v17, 0.0 }
  0xf4   : > { %v1207_v18 = vpop.f32.mrf.mxu0 }
  0xf5   : > { %1147 = vst [vmem:[%s1423_s28 + $0x30] sm:$0xff] %v562_v16   ;;  %v513_v20 = vadd.f32 %v1207_v18, %v1412_v23  ;;  %1240 = vmatprep.mubr.bf16.mxu1 %v562_v16  ;;  %v548_v27 = vmax.f32 %v502_v19, 0.0 }
  0xf6   : > { %v504_v21 = vpop.f32.mrf.mxu0  ;;  %1241 = vmatmul.mubr.bf16.gmra.mxu1 %v563_v13 }
  0xf7   : > { %v551_v24 = vmax.f32 %v513_v20, 0.0  ;;  %v505_v25 = vadd.f32 %v1412_v23, %v504_v21 }
  0xf8   : > { %v1210_v26 = vpop.f32.mrf.mxu0 }
  0xf9   : > { %v565_v28 = vpack.c.bf16 %v551_v24, %v550_v22  ;;  %v549_v29 = vmax.f32 %v505_v25, 0.0  ;;  %v526_v32 = vadd.f32 %v1210_v26, %v1412_v23 }
  0xfa   : > { %v517_v30 = vpop.f32.mrf.mxu0 }
  0xfb   : > { %1150 = vst [vmem:[%s1423_s28 + $0x48] sm:$0xff] %v565_v28   ;;  %v564_v31 = vpack.c.bf16 %v549_v29, %v548_v27  ;;  %v518_v34 = vadd.f32 %v1412_v23, %v517_v30  ;;  %v554_v37 = vmax.f32 %v526_v32, 0.0 }
  0xfc   : > { %v1211_v33 = vpop.f32.mrf.mxu0 }
  0xfd   : > { %1149 = vst [vmem:[%s1423_s28 + $0x40] sm:$0xff] %v564_v31   ;;  %v529_v35 = vadd.f32 %v1211_v33, %v1412_v23  ;;  %1244 = vmatprep.mubr.bf16.mxu1 %v564_v31  ;;  %v552_v40 = vmax.f32 %v518_v34, 0.0 }
  0xfe   : > { %v520_v36 = vpop.f32.mrf.mxu0  ;;  %1245 = vmatmul.mubr.bf16.gmra.mxu1 %v565_v28 }
  0xff   : > { %v555_v38 = vmax.f32 %v529_v35, 0.0  ;;  %v521_v39 = vadd.f32 %v1412_v23, %v520_v36 }
 0x101   : > { %v567_v41 = vpack.c.bf16 %v555_v38, %v554_v37  ;;  %v553_v42 = vmax.f32 %v521_v39, 0.0 }
 0x103   : > { %1152 = vst [vmem:[%s1423_s28 + $0x58] sm:$0xff] %v567_v41   ;;  %v566_v43 = vpack.c.bf16 %v553_v42, %v552_v40 }
 0x105   : > { %1151 = vst [vmem:[%s1423_s28 + $0x50] sm:$0xff] %v566_v43   ;;  %1248 = vmatprep.mubr.bf16.mxu1 %v566_v43 }
 0x106   : > { %1249 = vmatmul.mubr.bf16.gmra.mxu1 %v567_v41 }
 0x19e   : > { %v1230_v23 = vpop.f32.mrf.mxu0 }
 0x19f   : > { %v790_v45 = vadd.f32 %v1230_v23, %v1461_v44 }
 0x1a0   : > { %v781_v46 = vpop.f32.mrf.mxu0 }
 0x1a1   : > { %878 = vst [vmem:[%s1466_s10 + $0x10] sm:$0xff] %v790_v45  ;;  %v782_v47 = vadd.f32 %v1461_v44, %v781_v46 }
 0x1a2   : > { %v1231_v48 = vpop.f32.mrf.mxu0 }
 0x1a3   : > { %876 = vst [vmem:[%s1466_s10] sm:$0xff] %v782_v47  ;;  %v793_v49 = vadd.f32 %v1231_v48, %v1461_v44 }
 0x1a4   : > { %v784_v50 = vpop.f32.mrf.mxu0 }
 0x1a5   : > { %879 = vst [vmem:[%s1466_s10 + $0x18] sm:$0xff] %v793_v49  ;;  %v785_v51 = vadd.f32 %v1461_v44, %v784_v50 }
 0x1a6   : > { %v1234_v52 = vpop.f32.mrf.mxu1 }
 0x1a7   : > { %877 = vst [vmem:[%s1466_s10 + $0x8] sm:$0xff] %v785_v51  ;;  %v806_v53 = vadd.f32 %v1234_v52, %v1461_v44 }
 0x1a8   : > { %v797_v54 = vpop.f32.mrf.mxu1 }
 0x1a9   : > { %882 = vst [vmem:[%s1466_s10 + $0x30] sm:$0xff] %v806_v53  ;;  %v798_v55 = vadd.f32 %v1461_v44, %v797_v54 }
 0x1aa   : > { %v1235_v56 = vpop.f32.mrf.mxu1 }
 0x1ab   : > { %880 = vst [vmem:[%s1466_s10 + $0x20] sm:$0xff] %v798_v55  ;;  %v809_v57 = vadd.f32 %v1235_v56, %v1461_v44 }
 0x1ac   : > { %v800_v58 = vpop.f32.mrf.mxu1 }
 0x1ad   : > { %883 = vst [vmem:[%s1466_s10 + $0x38] sm:$0xff] %v809_v57  ;;  %v801_v59 = vadd.f32 %v1461_v44, %v800_v58 }
 0x1ae   : > { %v1238_v60 = vpop.f32.mrf.mxu1 }
 0x1af   : > { %881 = vst [vmem:[%s1466_s10 + $0x28] sm:$0xff] %v801_v59  ;;  %v822_v61 = vadd.f32 %v1238_v60, %v1461_v44 }
 0x1b0   : > { %v813_v62 = vpop.f32.mrf.mxu1 }
 0x1b1   : > { %886 = vst [vmem:[%s1466_s10 + $0x50] sm:$0xff] %v822_v61  ;;  %v814_v63 = vadd.f32 %v1461_v44, %v813_v62 }
 0x1b2   : > { %v1239_v0 = vpop.f32.mrf.mxu1 }
 0x1b3   : > { %884 = vst [vmem:[%s1466_s10 + $0x40] sm:$0xff] %v814_v63  ;;  %v825_v1 = vadd.f32 %v1239_v0, %v1461_v44 }
 0x1b4   : > { %v816_v2 = vpop.f32.mrf.mxu1 }
 0x1b5   : > { %887 = vst [vmem:[%s1466_s10 + $0x58] sm:$0xff] %v825_v1  ;;  %v817_v3 = vadd.f32 %v1461_v44, %v816_v2 }
 0x1b6   : > { %v1242_v4 = vpop.f32.mrf.mxu1 }
 0x1b7   : > { %885 = vst [vmem:[%s1466_s10 + $0x48] sm:$0xff] %v817_v3  ;;  %v838_v5 = vadd.f32 %v1242_v4, %v1461_v44 }
 0x1b8   : > { %v829_v6 = vpop.f32.mrf.mxu1 }
 0x1b9   : > { %890 = vst [vmem:[%s1466_s10 + $0x70] sm:$0xff] %v838_v5  ;;  %v830_v7 = vadd.f32 %v1461_v44, %v829_v6 }
 0x1ba   : > { %v1243_v8 = vpop.f32.mrf.mxu1 }
 0x1bb   : > { %888 = vst [vmem:[%s1466_s10 + $0x60] sm:$0xff] %v830_v7  ;;  %v841_v9 = vadd.f32 %v1243_v8, %v1461_v44 }
 0x1bc   : > { %v832_v10 = vpop.f32.mrf.mxu1 }
 0x1bd   : > { %891 = vst [vmem:[%s1466_s10 + $0x78] sm:$0xff] %v841_v9  ;;  %v833_v11 = vadd.f32 %v1461_v44, %v832_v10 }
 0x1be   : > { %v1246_v12 = vpop.f32.mrf.mxu1 }
 0x1bf   : > { %889 = vst [vmem:[%s1466_s10 + $0x68] sm:$0xff] %v833_v11  ;;  %v854_v13 = vadd.f32 %v1246_v12, %v1461_v44 }
 0x1c0   : > { %v845_v14 = vpop.f32.mrf.mxu1 }
 0x1c1   : > { %894 = vst [vmem:[%s1466_s10 + $0x90] sm:$0xff] %v854_v13  ;;  %v846_v15 = vadd.f32 %v1461_v44, %v845_v14 }
 0x1c2   : > { %v1247_v16 = vpop.f32.mrf.mxu1 }
 0x1c3   : > { %892 = vst [vmem:[%s1466_s10 + $0x80] sm:$0xff] %v846_v15  ;;  %v857_v17 = vadd.f32 %v1247_v16, %v1461_v44 }
 0x1c4   : > { %v848_v18 = vpop.f32.mrf.mxu1 }
 0x1c5   : > { %895 = vst [vmem:[%s1466_s10 + $0x98] sm:$0xff] %v857_v17  ;;  %v849_v19 = vadd.f32 %v1461_v44, %v848_v18 }
 0x1c6   : > { %v1250_v20 = vpop.f32.mrf.mxu1 }
 0x1c7   : > { %893 = vst [vmem:[%s1466_s10 + $0x88] sm:$0xff] %v849_v19  ;;  %v870_v21 = vadd.f32 %v1250_v20, %v1461_v44 }
 0x1c8   : > { %v861_v22 = vpop.f32.mrf.mxu1 }
 0x1c9   : > { %898 = vst [vmem:[%s1466_s10 + $0xb0] sm:$0xff] %v870_v21  ;;  %v862_v24 = vadd.f32 %v1461_v44, %v861_v22 }
 0x1ca   : > { %v1251_v25 = vpop.f32.mrf.mxu1 }
 0x1cb   : > { %896 = vst [vmem:[%s1466_s10 + $0xa0] sm:$0xff] %v862_v24  ;;  %v873_v26 = vadd.f32 %v1251_v25, %v1461_v44 }
 0x1cc   : > { %v864_v27 = vpop.f32.mrf.mxu1 }
 0x1cd   : > { %899 = vst [vmem:[%s1466_s10 + $0xb8] sm:$0xff] %v873_v26  ;;  %v865_v28 = vadd.f32 %v1461_v44, %v864_v27 }
 0x1cf   : > { %897 = vst [vmem:[%s1466_s10 + $0xa8] sm:$0xff] %v865_v28 }
 0x1d0 PF: > { %s17_s21 = sadd.s32 1, %s1303_s21  }
 0x1d1   : > { %p14_p4 = scmp.ge.s32.totalorder %s17_s21, 4  }
 0x1d3   :  { %16 = sbr.rel (!%p14_p4) target bundleno = 1 (0x1), region = 82 }

</bundles_post_ra>
